<compile_context>
chip_gen: v6e
topology: v6e:2x2x1
jax: 0.10.0
libtpu: 0.0.40
codegen_flags: <defaults>
</compile_context>

<pallas_src>
import functools

import jax
import jax.numpy as jnp
import numpy as np
from jax.experimental import pallas as pl
from jax.experimental.pallas import tpu as pltpu

_LOG_EPS = float(np.log(1e-8))


def listmle_kernel(eye_ref, y_pred_ref, y_label_ref, story_len_ref, o_ref):
    # eye_ref:       [N, N]  f32 identity, resident across the grid (constant index_map)
    # y_pred_ref:    [Bt, N] scores (any float dtype), natural layout
    # y_label_ref:   [Bt, N] gather indices (any int dtype)
    # story_len_ref: [1, Bt] int32 valid lengths
    # o_ref:         [1, Bt] f32 per-example log(prod + 1e-8)   (lane-dense)
    Bt, N = y_pred_ref.shape
    eye = eye_ref[...]
    dn = (((1,), (1,)), ((), ()))          # contract last dim of both -> [N, Bt]

    # ---- in-kernel transpose [Bt, N] -> [N, Bt] on the MXU (identity contraction).
    # Split f32 into three bf16-exact pieces (8+8+8 mantissa bits): each piece survives
    # the MXU's bf16 operand rounding exactly, each product with the 0/1 identity is
    # exact, so the reconstructed transpose is exact to ~2^-22 relative.
    x = y_pred_ref[...].astype(jnp.float32)                               # [Bt, N]
    hi = x.astype(jnp.bfloat16).astype(jnp.float32)
    r1 = x - hi
    mid = r1.astype(jnp.bfloat16).astype(jnp.float32)
    lo = r1 - mid
    yp = (jax.lax.dot_general(eye, hi, dn, preferred_element_type=jnp.float32)
          + jax.lax.dot_general(eye, mid, dn, preferred_element_type=jnp.float32)
          + jax.lax.dot_general(eye, lo, dn, preferred_element_type=jnp.float32))  # [N, Bt]

    # labels are small ints (< 256, bf16/f32-exact): one matmul transposes them exactly.
    lblf = y_label_ref[...].astype(jnp.float32)                           # [Bt, N]
    lbl = (jax.lax.dot_general(eye, lblf, dn, preferred_element_type=jnp.float32)
           + jnp.float32(0.5)).astype(jnp.int32)                          # [N, Bt]

    # ---- gather along positions: s[k, b] = yp[lbl[k, b], b]
    # unrolled one-hot select-sum over the small static N (no [N, N, Bt] blow-up).
    s = jnp.zeros((N, Bt), jnp.float32)
    for j in range(N):
        s = s + jnp.where(lbl == j, yp[j:j + 1, :], 0.0)

    # ---- reverse online softmax over suffixes (per-suffix running max):
    # log_prob[i] = (s[i] - m_i) - log(sum_{j>=i} exp(s[j] - m_i)); matches the
    # reference F.softmax(sort_pred[:, i:], dim=1)[:, 0] and never under/overflows.
    sl = story_len_ref[...]                                               # [1, Bt] int32
    m_run = s[N - 1:N, :]                  # suffix max
    l_run = jnp.ones_like(m_run)           # suffix sum of exp(s - m_run)
    log_prod = jnp.zeros_like(m_run)        # position N-1 contributes log(1) = 0
    for i in range(N - 2, -1, -1):
        s_i = s[i:i + 1, :]
        m_new = jnp.maximum(m_run, s_i)
        l_run = l_run * jnp.exp(m_run - m_new) + jnp.exp(s_i - m_new)
        m_run = m_new
        lp_i = (s_i - m_run) - jnp.log(l_run)
        # positions i >= story_len are excluded (reference sets their prob to 1).
        log_prod = log_prod + jnp.where(i < sl, lp_i, 0.0)

    # ---- log(prod + 1e-8) == logaddexp(log_prod, log 1e-8), underflow-free.
    c = jnp.float32(_LOG_EPS)
    mx = jnp.maximum(log_prod, c)
    o_ref[...] = mx + jnp.log(jnp.exp(log_prod - mx) + jnp.exp(c - mx))


@functools.partial(jax.jit, static_argnames=("block_b",))
def listmle_loss_pallas(y_pred, y_label, story_len, *, block_b=2048):
    B, N = y_pred.shape

    # --- position axis: pad to a multiple of 8 (sublane / matmul-operand alignment).
    # Padded score columns get -1e30 (exp -> 0, so suffix denominators of real
    # positions are unchanged); padded label columns point at a padded score column;
    # padded positions are >= story_len so they never enter the summed log-prob.
    N_pad = max(8, int(pl.cdiv(N, 8) * 8))
    yp, lbl = y_pred, y_label              # label dtype passed through (int8 OK: saves HBM on v5e)
    if N_pad != N:
        yp = jnp.pad(yp, ((0, 0), (0, N_pad - N)), constant_values=-1e30)
        lbl = jnp.pad(lbl, ((0, 0), (0, N_pad - N)), constant_values=N_pad - 1)

    # --- batch axis tiling: large lane-dense tiles (per-grid-step overhead dominated
    # small tiles), but keep >= 2 "parallel" grid steps when the batch allows it so
    # both v7x TensorCores get work.  Per-step VMEM stays < ~1 MiB at bt=2048.
    b128 = int(pl.cdiv(B, 128) * 128)
    bt = min(max(128, (block_b // 128) * 128), b128)
    if b128 >= 256:
        bt = min(bt, int(pl.cdiv(b128 // 2, 128) * 128))
    B_pad = int(pl.cdiv(B, bt) * bt)
    G = B_pad // bt

    sl = story_len.astype(jnp.int32)
    if B_pad != B:                         # padded rows: story_len 0 -> fully masked
        yp = jnp.pad(yp, ((0, B_pad - B), (0, 0)))
        lbl = jnp.pad(lbl, ((0, B_pad - B), (0, 0)))
        sl = jnp.pad(sl, ((0, B_pad - B),))
    sl2 = sl.reshape(1, B_pad)
    eye = jnp.eye(N_pad, dtype=jnp.float32)

    cost = pl.CostEstimate(
        flops=B_pad * (8 * N_pad * N_pad + 14 * N_pad),
        transcendentals=B_pad * (3 * N_pad + 3),
        bytes_accessed=B_pad * (N_pad * (jnp.dtype(yp.dtype).itemsize
                                         + jnp.dtype(lbl.dtype).itemsize) + 8)
                       + 4 * N_pad * N_pad,
    )

    out = pl.pallas_call(
        listmle_kernel,
        out_shape=jax.ShapeDtypeStruct((1, B_pad), jnp.float32),
        grid_spec=pltpu.PrefetchScalarGridSpec(
            num_scalar_prefetch=0,
            grid=(G,),
            in_specs=[
                pl.BlockSpec((N_pad, N_pad), lambda g: (0, 0)),  # resident identity
                pl.BlockSpec((bt, N_pad), lambda g: (g, 0)),     # scores, natural layout
                pl.BlockSpec((bt, N_pad), lambda g: (g, 0)),     # labels, natural layout
                pl.BlockSpec((1, bt), lambda g: (0, g)),         # lengths
            ],
            out_specs=pl.BlockSpec((1, bt), lambda g: (0, g)),   # lane-dense output
        ),
        compiler_params=pltpu.CompilerParams(dimension_semantics=("parallel",)),
        cost_estimate=cost,
    )(eye, yp, lbl, sl2)

    # per-example log(prod + 1e-8); padded lanes are sliced off before the mean.
    return -jnp.mean(out[0, :B])


def listmle_loss_ref(y_pred, y_label, story_len):
    """Pure-JAX mirror of the PyTorch listMLE_loss, for verification."""
    B, N = y_pred.shape
    s = jnp.take_along_axis(y_pred.astype(jnp.float32), y_label.astype(jnp.int32), axis=1)
    prod = []
    for i in range(N):
        prod.append(jax.nn.softmax(s[:, i:], axis=1)[:, 0])
    prod = jnp.stack(prod, axis=1)
    mask = jnp.arange(N)[None, :] >= story_len[:, None]
    prod = jnp.where(mask, 1.0, prod)
    all_prod = jnp.prod(prod, axis=1)
    return -jnp.mean(jnp.log(all_prod + 1e-8))


if __name__ == "__main__":
    key = jax.random.PRNGKey(0)

    def make_inputs(k, B, N):
        k1, k2, k3 = jax.random.split(k, 3)
        y_pred = jax.random.normal(k1, (B, N), dtype=jnp.float32)
        # per-row permutation of sentence indices (gather target order)
        y_label = jnp.argsort(jax.random.uniform(k2, (B, N)), axis=1).astype(jnp.int32)
        story_len = jax.random.randint(k3, (B,), 1, N + 1, dtype=jnp.int32)
        return y_pred, y_label, story_len

    # case 1: batch=8 stories x 8 sentences (single grid step, no padding)
    # case 2: batch=300 stories x 5 sentences (N padded 5->8, batch padded 300->512,
    #          2-step "parallel" grid)
    k1, k2 = jax.random.split(key)
    for idx, (kk, B, N) in enumerate(((k1, 8, 8), (k2, 300, 5))):
        y_pred, y_label, story_len = make_inputs(kk, B, N)
        loss = jax.block_until_ready(listmle_loss_pallas(y_pred, y_label, story_len))
        ref = jax.block_until_ready(listmle_loss_ref(y_pred, y_label, story_len))
        assert np.isfinite(np.asarray(loss)), f"case {idx}: non-finite loss"
        np.testing.assert_allclose(np.asarray(loss), np.asarray(ref), rtol=1e-5, atol=1e-4)

    # TODO(synk): NeuralNetwork.forward raises NotImplementedError in the source module and
    # the fit/evaluate/predict methods are host-side training glue; only the listMLE loss
    # (the concrete numeric hot path) is implemented as a Pallas kernel.
    print("KERNEL_OK")
</pallas_src>

<mosaic_0001>
module attributes {stable_mosaic.version = 11 : i64} {
  func.func @listmle_kernel(%arg0: i32, %arg1: memref<8x8xf32, #tpu.memory_space<vmem>>, %arg2: memref<128x8xf32, #tpu.memory_space<vmem>>, %arg3: memref<128x8xi32, #tpu.memory_space<vmem>>, %arg4: memref<1x128xi32, #tpu.memory_space<vmem>>, %arg5: memref<1x128xf32, #tpu.memory_space<vmem>>) attributes {dimension_semantics = [#tpu.dimension_semantics<parallel>], iteration_bounds = array<i64: 1>, scalar_prefetch = 0 : i64, scratch_operands = 0 : i64, tpu.core_type = #tpu.core_type<tc>, window_params = [{pipeline_mode = #tpu.pipeline_mode<synchronous>, transform_indices = @transform_0, window_bounds = array<i64: 8, 8>}, {transform_indices = @transform_1, window_bounds = array<i64: 128, 8>}, {transform_indices = @transform_2, window_bounds = array<i64: 128, 8>}, {transform_indices = @transform_3, window_bounds = array<i64: 1, 128>}, {transform_indices = @transform_4, window_bounds = array<i64: 1, 128>}]} {
    %c0 = arith.constant 0 : index
    %c0_0 = arith.constant 0 : index
    %0 = vector.load %arg1[%c0, %c0_0] : memref<8x8xf32, #tpu.memory_space<vmem>>, vector<8x8xf32>
    %c0_1 = arith.constant 0 : index
    %c0_2 = arith.constant 0 : index
    %1 = vector.load %arg2[%c0_1, %c0_2] : memref<128x8xf32, #tpu.memory_space<vmem>>, vector<128x8xf32>
    %2 = arith.truncf %1 : vector<128x8xf32> to vector<128x8xbf16>
    %3 = arith.extf %2 : vector<128x8xbf16> to vector<128x8xf32>
    %4 = arith.subf %1, %3 : vector<128x8xf32>
    %5 = arith.truncf %4 : vector<128x8xf32> to vector<128x8xbf16>
    %6 = arith.extf %5 : vector<128x8xbf16> to vector<128x8xf32>
    %7 = arith.subf %4, %6 : vector<128x8xf32>
    %cst = arith.constant dense<0.000000e+00> : vector<8x128xf32>
    %8 = tpu.matmul %0, %3, %cst {dimension_numbers = #tpu.dot_dimension_numbers<[1], [1], [0], [0], [0, 0, 1, 0], [], []>} : vector<8x8xf32>, vector<128x8xf32>, vector<8x128xf32> -> vector<8x128xf32>
    %cst_3 = arith.constant dense<0.000000e+00> : vector<8x128xf32>
    %9 = tpu.matmul %0, %6, %cst_3 {dimension_numbers = #tpu.dot_dimension_numbers<[1], [1], [0], [0], [0, 0, 1, 0], [], []>} : vector<8x8xf32>, vector<128x8xf32>, vector<8x128xf32> -> vector<8x128xf32>
    %10 = arith.addf %8, %9 : vector<8x128xf32>
    %cst_4 = arith.constant dense<0.000000e+00> : vector<8x128xf32>
    %11 = tpu.matmul %0, %7, %cst_4 {dimension_numbers = #tpu.dot_dimension_numbers<[1], [1], [0], [0], [0, 0, 1, 0], [], []>} : vector<8x8xf32>, vector<128x8xf32>, vector<8x128xf32> -> vector<8x128xf32>
    %12 = arith.addf %10, %11 : vector<8x128xf32>
    %c0_5 = arith.constant 0 : index
    %c0_6 = arith.constant 0 : index
    %13 = vector.load %arg3[%c0_5, %c0_6] : memref<128x8xi32, #tpu.memory_space<vmem>>, vector<128x8xi32>
    %14 = arith.sitofp %13 : vector<128x8xi32> to vector<128x8xf32>
    %cst_7 = arith.constant dense<0.000000e+00> : vector<8x128xf32>
    %15 = tpu.matmul %0, %14, %cst_7 {dimension_numbers = #tpu.dot_dimension_numbers<[1], [1], [0], [0], [0, 0, 1, 0], [], []>} : vector<8x8xf32>, vector<128x8xf32>, vector<8x128xf32> -> vector<8x128xf32>
    %cst_8 = arith.constant 5.000000e-01 : f32
    %16 = vector.broadcast %cst_8 : f32 to vector<8x128xf32>
    %17 = arith.addf %15, %16 : vector<8x128xf32>
    %18 = arith.fptosi %17 : vector<8x128xf32> to vector<8x128xi32>
    %cst_9 = arith.constant 0.000000e+00 : f32
    %19 = vector.broadcast %cst_9 : f32 to vector<8x128xf32>
    %c0_i32 = arith.constant 0 : i32
    %20 = vector.broadcast %c0_i32 : i32 to vector<8x128xi32>
    %21 = arith.cmpi eq, %18, %20 : vector<8x128xi32>
    %22 = vector.extract_strided_slice %12 {offsets = [0, 0], sizes = [1, 128], strides = [1, 1]} : vector<8x128xf32> to vector<1x128xf32>
    %cst_10 = arith.constant 0.000000e+00 : f32
    %23 = vector.shape_cast %22 : vector<1x128xf32> to vector<1x128xf32>
    %24 = vector.broadcast %23 : vector<1x128xf32> to vector<8x128xf32>
    %25 = vector.broadcast %cst_10 : f32 to vector<8x128xf32>
    %26 = arith.select %21, %24, %25 : vector<8x128xi1>, vector<8x128xf32>
    %27 = arith.addf %19, %26 : vector<8x128xf32>
    %c1_i32 = arith.constant 1 : i32
    %28 = vector.broadcast %c1_i32 : i32 to vector<8x128xi32>
    %29 = arith.cmpi eq, %18, %28 : vector<8x128xi32>
    %30 = vector.extract_strided_slice %12 {offsets = [1, 0], sizes = [1, 128], strides = [1, 1]} : vector<8x128xf32> to vector<1x128xf32>
    %cst_11 = arith.constant 0.000000e+00 : f32
    %31 = vector.shape_cast %30 : vector<1x128xf32> to vector<1x128xf32>
    %32 = vector.broadcast %31 : vector<1x128xf32> to vector<8x128xf32>
    %33 = vector.broadcast %cst_11 : f32 to vector<8x128xf32>
    %34 = arith.select %29, %32, %33 : vector<8x128xi1>, vector<8x128xf32>
    %35 = arith.addf %27, %34 : vector<8x128xf32>
    %c2_i32 = arith.constant 2 : i32
    %36 = vector.broadcast %c2_i32 : i32 to vector<8x128xi32>
    %37 = arith.cmpi eq, %18, %36 : vector<8x128xi32>
    %38 = vector.extract_strided_slice %12 {offsets = [2, 0], sizes = [1, 128], strides = [1, 1]} : vector<8x128xf32> to vector<1x128xf32>
    %cst_12 = arith.constant 0.000000e+00 : f32
    %39 = vector.shape_cast %38 : vector<1x128xf32> to vector<1x128xf32>
    %40 = vector.broadcast %39 : vector<1x128xf32> to vector<8x128xf32>
    %41 = vector.broadcast %cst_12 : f32 to vector<8x128xf32>
    %42 = arith.select %37, %40, %41 : vector<8x128xi1>, vector<8x128xf32>
    %43 = arith.addf %35, %42 : vector<8x128xf32>
    %c3_i32 = arith.constant 3 : i32
    %44 = vector.broadcast %c3_i32 : i32 to vector<8x128xi32>
    %45 = arith.cmpi eq, %18, %44 : vector<8x128xi32>
    %46 = vector.extract_strided_slice %12 {offsets = [3, 0], sizes = [1, 128], strides = [1, 1]} : vector<8x128xf32> to vector<1x128xf32>
    %cst_13 = arith.constant 0.000000e+00 : f32
    %47 = vector.shape_cast %46 : vector<1x128xf32> to vector<1x128xf32>
    %48 = vector.broadcast %47 : vector<1x128xf32> to vector<8x128xf32>
    %49 = vector.broadcast %cst_13 : f32 to vector<8x128xf32>
    %50 = arith.select %45, %48, %49 : vector<8x128xi1>, vector<8x128xf32>
    %51 = arith.addf %43, %50 : vector<8x128xf32>
    %c4_i32 = arith.constant 4 : i32
    %52 = vector.broadcast %c4_i32 : i32 to vector<8x128xi32>
    %53 = arith.cmpi eq, %18, %52 : vector<8x128xi32>
    %54 = vector.extract_strided_slice %12 {offsets = [4, 0], sizes = [1, 128], strides = [1, 1]} : vector<8x128xf32> to vector<1x128xf32>
    %cst_14 = arith.constant 0.000000e+00 : f32
    %55 = vector.shape_cast %54 : vector<1x128xf32> to vector<1x128xf32>
    %56 = vector.broadcast %55 : vector<1x128xf32> to vector<8x128xf32>
    %57 = vector.broadcast %cst_14 : f32 to vector<8x128xf32>
    %58 = arith.select %53, %56, %57 : vector<8x128xi1>, vector<8x128xf32>
    %59 = arith.addf %51, %58 : vector<8x128xf32>
    %c5_i32 = arith.constant 5 : i32
    %60 = vector.broadcast %c5_i32 : i32 to vector<8x128xi32>
    %61 = arith.cmpi eq, %18, %60 : vector<8x128xi32>
    %62 = vector.extract_strided_slice %12 {offsets = [5, 0], sizes = [1, 128], strides = [1, 1]} : vector<8x128xf32> to vector<1x128xf32>
    %cst_15 = arith.constant 0.000000e+00 : f32
    %63 = vector.shape_cast %62 : vector<1x128xf32> to vector<1x128xf32>
    %64 = vector.broadcast %63 : vector<1x128xf32> to vector<8x128xf32>
    %65 = vector.broadcast %cst_15 : f32 to vector<8x128xf32>
    %66 = arith.select %61, %64, %65 : vector<8x128xi1>, vector<8x128xf32>
    %67 = arith.addf %59, %66 : vector<8x128xf32>
    %c6_i32 = arith.constant 6 : i32
    %68 = vector.broadcast %c6_i32 : i32 to vector<8x128xi32>
    %69 = arith.cmpi eq, %18, %68 : vector<8x128xi32>
    %70 = vector.extract_strided_slice %12 {offsets = [6, 0], sizes = [1, 128], strides = [1, 1]} : vector<8x128xf32> to vector<1x128xf32>
    %cst_16 = arith.constant 0.000000e+00 : f32
    %71 = vector.shape_cast %70 : vector<1x128xf32> to vector<1x128xf32>
    %72 = vector.broadcast %71 : vector<1x128xf32> to vector<8x128xf32>
    %73 = vector.broadcast %cst_16 : f32 to vector<8x128xf32>
    %74 = arith.select %69, %72, %73 : vector<8x128xi1>, vector<8x128xf32>
    %75 = arith.addf %67, %74 : vector<8x128xf32>
    %c7_i32 = arith.constant 7 : i32
    %76 = vector.broadcast %c7_i32 : i32 to vector<8x128xi32>
    %77 = arith.cmpi eq, %18, %76 : vector<8x128xi32>
    %78 = vector.extract_strided_slice %12 {offsets = [7, 0], sizes = [1, 128], strides = [1, 1]} : vector<8x128xf32> to vector<1x128xf32>
    %cst_17 = arith.constant 0.000000e+00 : f32
    %79 = vector.shape_cast %78 : vector<1x128xf32> to vector<1x128xf32>
    %80 = vector.broadcast %79 : vector<1x128xf32> to vector<8x128xf32>
    %81 = vector.broadcast %cst_17 : f32 to vector<8x128xf32>
    %82 = arith.select %77, %80, %81 : vector<8x128xi1>, vector<8x128xf32>
    %83 = arith.addf %75, %82 : vector<8x128xf32>
    %c0_18 = arith.constant 0 : index
    %c0_19 = arith.constant 0 : index
    %84 = vector.load %arg4[%c0_18, %c0_19] : memref<1x128xi32, #tpu.memory_space<vmem>>, vector<1x128xi32>
    %85 = vector.extract_strided_slice %83 {offsets = [7, 0], sizes = [1, 128], strides = [1, 1]} : vector<8x128xf32> to vector<1x128xf32>
    %cst_20 = arith.constant 1.000000e+00 : f32
    %86 = vector.broadcast %cst_20 : f32 to vector<1x128xf32>
    %cst_21 = arith.constant 0.000000e+00 : f32
    %87 = vector.broadcast %cst_21 : f32 to vector<1x128xf32>
    %88 = vector.extract_strided_slice %83 {offsets = [6, 0], sizes = [1, 128], strides = [1, 1]} : vector<8x128xf32> to vector<1x128xf32>
    %89 = arith.maximumf %85, %88 : vector<1x128xf32>
    %90 = arith.subf %85, %89 : vector<1x128xf32>
    %91 = math.exp %90 : vector<1x128xf32>
    %92 = arith.mulf %86, %91 : vector<1x128xf32>
    %93 = arith.subf %88, %89 : vector<1x128xf32>
    %94 = math.exp %93 : vector<1x128xf32>
    %95 = arith.addf %92, %94 : vector<1x128xf32>
    %96 = arith.subf %88, %89 : vector<1x128xf32>
    %97 = math.log %95 : vector<1x128xf32>
    %98 = arith.subf %96, %97 : vector<1x128xf32>
    %c6_i32_22 = arith.constant 6 : i32
    %99 = vector.broadcast %c6_i32_22 : i32 to vector<1x128xi32>
    %100 = arith.cmpi sgt, %84, %99 : vector<1x128xi32>
    %cst_23 = arith.constant 0.000000e+00 : f32
    %101 = vector.broadcast %cst_23 : f32 to vector<1x128xf32>
    %102 = arith.select %100, %98, %101 : vector<1x128xi1>, vector<1x128xf32>
    %103 = arith.addf %87, %102 : vector<1x128xf32>
    %104 = vector.extract_strided_slice %83 {offsets = [5, 0], sizes = [1, 128], strides = [1, 1]} : vector<8x128xf32> to vector<1x128xf32>
    %105 = arith.maximumf %89, %104 : vector<1x128xf32>
    %106 = arith.subf %89, %105 : vector<1x128xf32>
    %107 = math.exp %106 : vector<1x128xf32>
    %108 = arith.mulf %95, %107 : vector<1x128xf32>
    %109 = arith.subf %104, %105 : vector<1x128xf32>
    %110 = math.exp %109 : vector<1x128xf32>
    %111 = arith.addf %108, %110 : vector<1x128xf32>
    %112 = arith.subf %104, %105 : vector<1x128xf32>
    %113 = math.log %111 : vector<1x128xf32>
    %114 = arith.subf %112, %113 : vector<1x128xf32>
    %c5_i32_24 = arith.constant 5 : i32
    %115 = vector.broadcast %c5_i32_24 : i32 to vector<1x128xi32>
    %116 = arith.cmpi sgt, %84, %115 : vector<1x128xi32>
    %cst_25 = arith.constant 0.000000e+00 : f32
    %117 = vector.broadcast %cst_25 : f32 to vector<1x128xf32>
    %118 = arith.select %116, %114, %117 : vector<1x128xi1>, vector<1x128xf32>
    %119 = arith.addf %103, %118 : vector<1x128xf32>
    %120 = vector.extract_strided_slice %83 {offsets = [4, 0], sizes = [1, 128], strides = [1, 1]} : vector<8x128xf32> to vector<1x128xf32>
    %121 = arith.maximumf %105, %120 : vector<1x128xf32>
    %122 = arith.subf %105, %121 : vector<1x128xf32>
    %123 = math.exp %122 : vector<1x128xf32>
    %124 = arith.mulf %111, %123 : vector<1x128xf32>
    %125 = arith.subf %120, %121 : vector<1x128xf32>
    %126 = math.exp %125 : vector<1x128xf32>
    %127 = arith.addf %124, %126 : vector<1x128xf32>
    %128 = arith.subf %120, %121 : vector<1x128xf32>
    %129 = math.log %127 : vector<1x128xf32>
    %130 = arith.subf %128, %129 : vector<1x128xf32>
    %c4_i32_26 = arith.constant 4 : i32
    %131 = vector.broadcast %c4_i32_26 : i32 to vector<1x128xi32>
    %132 = arith.cmpi sgt, %84, %131 : vector<1x128xi32>
    %cst_27 = arith.constant 0.000000e+00 : f32
    %133 = vector.broadcast %cst_27 : f32 to vector<1x128xf32>
    %134 = arith.select %132, %130, %133 : vector<1x128xi1>, vector<1x128xf32>
    %135 = arith.addf %119, %134 : vector<1x128xf32>
    %136 = vector.extract_strided_slice %83 {offsets = [3, 0], sizes = [1, 128], strides = [1, 1]} : vector<8x128xf32> to vector<1x128xf32>
    %137 = arith.maximumf %121, %136 : vector<1x128xf32>
    %138 = arith.subf %121, %137 : vector<1x128xf32>
    %139 = math.exp %138 : vector<1x128xf32>
    %140 = arith.mulf %127, %139 : vector<1x128xf32>
    %141 = arith.subf %136, %137 : vector<1x128xf32>
    %142 = math.exp %141 : vector<1x128xf32>
    %143 = arith.addf %140, %142 : vector<1x128xf32>
    %144 = arith.subf %136, %137 : vector<1x128xf32>
    %145 = math.log %143 : vector<1x128xf32>
    %146 = arith.subf %144, %145 : vector<1x128xf32>
    %c3_i32_28 = arith.constant 3 : i32
    %147 = vector.broadcast %c3_i32_28 : i32 to vector<1x128xi32>
    %148 = arith.cmpi sgt, %84, %147 : vector<1x128xi32>
    %cst_29 = arith.constant 0.000000e+00 : f32
    %149 = vector.broadcast %cst_29 : f32 to vector<1x128xf32>
    %150 = arith.select %148, %146, %149 : vector<1x128xi1>, vector<1x128xf32>
    %151 = arith.addf %135, %150 : vector<1x128xf32>
    %152 = vector.extract_strided_slice %83 {offsets = [2, 0], sizes = [1, 128], strides = [1, 1]} : vector<8x128xf32> to vector<1x128xf32>
    %153 = arith.maximumf %137, %152 : vector<1x128xf32>
    %154 = arith.subf %137, %153 : vector<1x128xf32>
    %155 = math.exp %154 : vector<1x128xf32>
    %156 = arith.mulf %143, %155 : vector<1x128xf32>
    %157 = arith.subf %152, %153 : vector<1x128xf32>
    %158 = math.exp %157 : vector<1x128xf32>
    %159 = arith.addf %156, %158 : vector<1x128xf32>
    %160 = arith.subf %152, %153 : vector<1x128xf32>
    %161 = math.log %159 : vector<1x128xf32>
    %162 = arith.subf %160, %161 : vector<1x128xf32>
    %c2_i32_30 = arith.constant 2 : i32
    %163 = vector.broadcast %c2_i32_30 : i32 to vector<1x128xi32>
    %164 = arith.cmpi sgt, %84, %163 : vector<1x128xi32>
    %cst_31 = arith.constant 0.000000e+00 : f32
    %165 = vector.broadcast %cst_31 : f32 to vector<1x128xf32>
    %166 = arith.select %164, %162, %165 : vector<1x128xi1>, vector<1x128xf32>
    %167 = arith.addf %151, %166 : vector<1x128xf32>
    %168 = vector.extract_strided_slice %83 {offsets = [1, 0], sizes = [1, 128], strides = [1, 1]} : vector<8x128xf32> to vector<1x128xf32>
    %169 = arith.maximumf %153, %168 : vector<1x128xf32>
    %170 = arith.subf %153, %169 : vector<1x128xf32>
    %171 = math.exp %170 : vector<1x128xf32>
    %172 = arith.mulf %159, %171 : vector<1x128xf32>
    %173 = arith.subf %168, %169 : vector<1x128xf32>
    %174 = math.exp %173 : vector<1x128xf32>
    %175 = arith.addf %172, %174 : vector<1x128xf32>
    %176 = arith.subf %168, %169 : vector<1x128xf32>
    %177 = math.log %175 : vector<1x128xf32>
    %178 = arith.subf %176, %177 : vector<1x128xf32>
    %c1_i32_32 = arith.constant 1 : i32
    %179 = vector.broadcast %c1_i32_32 : i32 to vector<1x128xi32>
    %180 = arith.cmpi sgt, %84, %179 : vector<1x128xi32>
    %cst_33 = arith.constant 0.000000e+00 : f32
    %181 = vector.broadcast %cst_33 : f32 to vector<1x128xf32>
    %182 = arith.select %180, %178, %181 : vector<1x128xi1>, vector<1x128xf32>
    %183 = arith.addf %167, %182 : vector<1x128xf32>
    %184 = vector.extract_strided_slice %83 {offsets = [0, 0], sizes = [1, 128], strides = [1, 1]} : vector<8x128xf32> to vector<1x128xf32>
    %185 = arith.maximumf %169, %184 : vector<1x128xf32>
    %186 = arith.subf %169, %185 : vector<1x128xf32>
    %187 = math.exp %186 : vector<1x128xf32>
    %188 = arith.mulf %175, %187 : vector<1x128xf32>
    %189 = arith.subf %184, %185 : vector<1x128xf32>
    %190 = math.exp %189 : vector<1x128xf32>
    %191 = arith.addf %188, %190 : vector<1x128xf32>
    %192 = arith.subf %184, %185 : vector<1x128xf32>
    %193 = math.log %191 : vector<1x128xf32>
    %194 = arith.subf %192, %193 : vector<1x128xf32>
    %c0_i32_34 = arith.constant 0 : i32
    %195 = vector.broadcast %c0_i32_34 : i32 to vector<1x128xi32>
    %196 = arith.cmpi sgt, %84, %195 : vector<1x128xi32>
    %cst_35 = arith.constant 0.000000e+00 : f32
    %197 = vector.broadcast %cst_35 : f32 to vector<1x128xf32>
    %198 = arith.select %196, %194, %197 : vector<1x128xi1>, vector<1x128xf32>
    %199 = arith.addf %183, %198 : vector<1x128xf32>
    %cst_36 = arith.constant -18.420681 : f32
    %200 = vector.broadcast %cst_36 : f32 to vector<1x128xf32>
    %201 = arith.maximumf %199, %200 : vector<1x128xf32>
    %202 = arith.subf %199, %201 : vector<1x128xf32>
    %203 = math.exp %202 : vector<1x128xf32>
    %cst_37 = arith.constant -18.420681 : f32
    %204 = vector.broadcast %cst_37 : f32 to vector<1x128xf32>
    %205 = arith.subf %204, %201 : vector<1x128xf32>
    %206 = math.exp %205 : vector<1x128xf32>
    %207 = arith.addf %203, %206 : vector<1x128xf32>
    %208 = math.log %207 : vector<1x128xf32>
    %209 = arith.addf %201, %208 : vector<1x128xf32>
    %c0_38 = arith.constant 0 : index
    %c0_39 = arith.constant 0 : index
    %210 = vector.load %arg5[%c0_38, %c0_39] : memref<1x128xf32, #tpu.memory_space<vmem>>, vector<1x128xf32>
    tpu.vector_store %arg5[%c0_38, %c0_39], %209 {strides = array<i32>} : memref<1x128xf32, #tpu.memory_space<vmem>>, vector<1x128xf32>,
    return
  }
  func.func @transform_0(%arg0: i32) -> (i32, i32) {
    %c0_i32 = arith.constant 0 : i32
    %c0_i32_0 = arith.constant 0 : i32
    %c0_i32_1 = arith.constant 0 : i32
    return %c0_i32, %c0_i32_0 : i32, i32
  }
  func.func @transform_1(%arg0: i32) -> (i32, i32) {
    %c0_i32 = arith.constant 0 : i32
    %c0_i32_0 = arith.constant 0 : i32
    return %arg0, %c0_i32 : i32, i32
  }
  func.func @transform_2(%arg0: i32) -> (i32, i32) {
    %c0_i32 = arith.constant 0 : i32
    %c0_i32_0 = arith.constant 0 : i32
    return %arg0, %c0_i32 : i32, i32
  }
  func.func @transform_3(%arg0: i32) -> (i32, i32) {
    %c0_i32 = arith.constant 0 : i32
    %c0_i32_0 = arith.constant 0 : i32
    return %c0_i32, %arg0 : i32, i32
  }
  func.func @transform_4(%arg0: i32) -> (i32, i32) {
    %c0_i32 = arith.constant 0 : i32
    %c0_i32_0 = arith.constant 0 : i32
    return %c0_i32, %arg0 : i32, i32
  }
}

</mosaic_0001>

<bundles_post_ra>
// kernel: listmle_loss_pallas.1
= control target key start
LH: loop header
LB: loop body
LE: loop exit
PB: predicated region body
PF: predicated region fallthrough
CT: control target
= control target key end

     0   :  { %v1313_v0 = vmov 0.0   ;;  %vm1314_vm0 = vmmov 0   ;;  %vm114_vm1 = vcmask 64512   ;;  %s1805_s1 = inlined_call_operand.vmem [shape: f32[128,8], index: 1, kind: input, shape index: {}]   ;;  %s1806_s2 = inlined_call_operand.vmem [shape: s32[128,8], index: 2, kind: input, shape index: {}]   ;;  %s1807_s0 = inlined_call_operand.vmem [shape: f32[8,8], index: 0, kind: input, shape index: {}]   ;;  %s1808_s3 = inlined_call_operand.vmem [shape: s32[1,128], index: 3, kind: input, shape index: {}]   ;;  %s1809_s4 = inlined_call_operand.vmem [shape: f32[1,128], index: 4, kind: output, shape index: {}]  }
   0x1   :  { %1155 = vmatprep.subr.mxu1 %v1313_v0  ;;  %v32_v1 = vld [vmem:[%s1805_s1 + $0x70] sm:$0xff]  ;;  %v33_v2 = vld [vmem:[%s1805_s1 + $0x78] sm:$0xff]  ;;  %1120 = vmatprep.subr.mxu0 %v1313_v0  ;;  %v30_v3 = vld [vmem:[%s1805_s1 + $0x60] sm:$0xff] }
   0x2   :  { %v41_v4 = vpack.c.bf16 %v33_v2, %v32_v1  ;;  %v31_v5 = vld [vmem:[%s1805_s1 + $0x68] sm:$0xff]  ;;  %1187 = vmatprep.mubr.msk.f32.mxu1 %vm1314_vm0, %v1313_v0  ;;  %1152 = vmatprep.mubr.msk.f32.mxu0 %vm1314_vm0, %v1313_v0  ;;  %v28_v11 = vld [vmem:[%s1805_s1 + $0x50] sm:$0xff]  ;;  %v29_v12 = vld [vmem:[%s1805_s1 + $0x58] sm:$0xff] }
   0x3   :  { %v40_v6 = vpack.c.bf16 %v31_v5, %v30_v3  ;;  %v39_v18 = vpack.c.bf16 %v29_v12, %v28_v11  ;;  %v26_v24 = vld [vmem:[%s1805_s1 + $0x40] sm:$0xff]  ;;  %v27_v25 = vld [vmem:[%s1805_s1 + $0x48] sm:$0xff]  ;;  %v24_v34 = vld [vmem:[%s1805_s1 + $0x30] sm:$0xff] }
   0x4   :  { %v57_v7 = vunpack.c.h.bf16 %v41_v4  ;;  %v56_v8 = vunpack.c.l.bf16 %v41_v4  ;;  %v38_v29 = vpack.c.bf16 %v27_v25, %v26_v24  ;;  %v25_v35 = vld [vmem:[%s1805_s1 + $0x38] sm:$0xff]  ;;  %v22_v44 = vld [vmem:[%s1805_s1 + $0x20] sm:$0xff]  ;;  %v23_v45 = vld [vmem:[%s1805_s1 + $0x28] sm:$0xff] }
   0x5   :  { %v55_v9 = vunpack.c.h.bf16 %v40_v6  ;;  %v54_v10 = vunpack.c.l.bf16 %v40_v6  ;;  %v53_v22 = vunpack.c.h.bf16 %v39_v18  ;;  %v52_v23 = vunpack.c.l.bf16 %v39_v18  ;;  %v20_v54 = vld [vmem:[%s1805_s1 + $0x10] sm:$0xff]  ;;  %v21_v55 = vld [vmem:[%s1805_s1 + $0x18] sm:$0xff] }
   0x6   :  { %v1365_v13 = vsub.f32 %v33_v2, %v57_v7  ;;  %1156 = vmatpush3.xpose.msk.msra.mxu1 %vm114_vm1, %v57_v7  ;;  %v1368_v14 = vsub.f32 %v32_v1, %v56_v8  ;;  %v51_v32 = vunpack.c.h.bf16 %v38_v29  ;;  %v50_v33 = vunpack.c.l.bf16 %v38_v29  ;;  %v18_v1 = vld [vmem:[%s1805_s1] sm:$0xff]  ;;  %v19_v2 = vld [vmem:[%s1805_s1 + $0x8] sm:$0xff] }
   0x7   :  { %1157 = vmatprep.subr.mxu1 %v1313_v0  ;;  %v1375_v16 = vsub.f32 %v31_v5, %v55_v9  ;;  %v1377_v17 = vsub.f32 %v30_v3, %v54_v10  ;;  %v1403_v27 = vsub.f32 %v29_v12, %v53_v22  ;;  %v1405_v28 = vsub.f32 %v28_v11, %v52_v23  ;;  %v1567_v29 = vld [vmem:[%s1807_s0] sm:$0xff] }
   0x8   :  { %v1373_v15 = vpack.c.bf16 %v1365_v13, %v1368_v14  ;;  %v1431_v37 = vsub.f32 %v27_v25, %v51_v32  ;;  %v1433_v38 = vsub.f32 %v26_v24, %v50_v33  ;;  %v37_v39 = vpack.c.bf16 %v25_v35, %v24_v34  ;;  %v488_v24 = vld [vmem:[%s1806_s2 + $0x78] sm:$0xff] }
   0x9   :  { %v1388_v21 = vpack.c.bf16 %v1375_v16, %v1377_v17  ;;  %v1416_v31 = vpack.c.bf16 %v1403_v27, %v1405_v28  ;;  %v36_v49 = vpack.c.bf16 %v23_v45, %v22_v44  ;;  %v35_v59 = vpack.c.bf16 %v21_v55, %v20_v54 }
   0xa   :  { %1158 = vmatpush3.xpose.msk.msra.mxu1 %vm114_vm1, %v56_v8  ;;  %v97_v19 = vunpack.c.h.bf16 %v1373_v15  ;;  %v96_v20 = vunpack.c.l.bf16 %v1373_v15  ;;  %v1444_v41 = vpack.c.bf16 %v1431_v37, %v1433_v38  ;;  %v49_v42 = vunpack.c.h.bf16 %v37_v39 }
   0xb   :  { %1159 = vmatprep.subr.mxu1 %v1313_v0  ;;  %v95_v26 = vunpack.c.h.bf16 %v1388_v21  ;;  %v94_v30 = vunpack.c.l.bf16 %v1388_v21  ;;  %v93_v36 = vunpack.c.h.bf16 %v1416_v31  ;;  %v92_v40 = vunpack.c.l.bf16 %v1416_v31  ;;  %v481_v21 = vld [vmem:[%s1806_s2 + $0x40] sm:$0xff]  ;;  %v479_v31 = vld [vmem:[%s1806_s2 + $0x30] sm:$0xff] }
   0xc   :  { %1121 = vmatpush3.xpose.msk.msra.mxu0 %vm114_vm1, %v97_v19  ;;  %v48_v43 = vunpack.c.l.bf16 %v37_v39  ;;  %v91_v46 = vunpack.c.h.bf16 %v1444_v41  ;;  %v1459_v47 = vsub.f32 %v25_v35, %v49_v42  ;;  %v90_v50 = vunpack.c.l.bf16 %v1444_v41  ;;  %v486_v39 = vld [vmem:[%s1806_s2 + $0x68] sm:$0xff]  ;;  %v477_v41 = vld [vmem:[%s1806_s2 + $0x20] sm:$0xff] }
   0xd   :  { %1122 = vmatprep.subr.mxu0 %v1313_v0  ;;  %v47_v52 = vunpack.c.h.bf16 %v36_v49  ;;  %v46_v53 = vunpack.c.l.bf16 %v36_v49  ;;  %v45_v62 = vunpack.c.h.bf16 %v35_v59  ;;  %v44_v63 = vunpack.c.l.bf16 %v35_v59 }
   0xe   :  { %1160 = vmatpush3.xpose.msk.msra.mxu1 %vm114_vm1, %v55_v9  ;;  %v1461_v48 = vsub.f32 %v24_v34, %v48_v43  ;;  %v34_v6 = vpack.c.bf16 %v19_v2, %v18_v1  ;;  %v110_v49 = vsub.f32 %v1377_v17, %v94_v30 }
   0xf   :  { %1161 = vmatprep.subr.mxu1 %v1313_v0  ;;  %v1487_v57 = vsub.f32 %v23_v45, %v47_v52  ;;  %v1489_v58 = vsub.f32 %v22_v44, %v46_v53  ;;  %v1515_v4 = vsub.f32 %v21_v55, %v45_v62  ;;  %v1517_v5 = vsub.f32 %v20_v54, %v44_v63  ;;  %v485_v44 = vld [vmem:[%s1806_s2 + $0x60] sm:$0xff]  ;;  %v484_v45 = vld [vmem:[%s1806_s2 + $0x58] sm:$0xff] }
  0x10   :  { %1123 = vmatpush3.xpose.msk.msra.mxu0 %vm114_vm1, %v96_v20  ;;  %v1472_v51 = vpack.c.bf16 %v1459_v47, %v1461_v48  ;;  %v43_v9 = vunpack.c.h.bf16 %v34_v6  ;;  %v500_v15 = vcvt.s32.f32 %v484_v45  ;;  %v476_v55 = vld [vmem:[%s1806_s2 + $0x18] sm:$0xff] }
  0x11   :  { %1124 = vmatprep.subr.mxu0 %v1313_v0  ;;  %v1500_v61 = vpack.c.bf16 %v1487_v57, %v1489_v58  ;;  %v1528_v8 = vpack.c.bf16 %v1515_v4, %v1517_v5 }
  0x12   :  { %1162 = vmatpush3.xpose.msk.msra.mxu1 %vm114_vm1, %v54_v10  ;;  %v89_v56 = vunpack.c.h.bf16 %v1472_v51  ;;  %v88_v60 = vunpack.c.l.bf16 %v1472_v51  ;;  %v42_v10 = vunpack.c.l.bf16 %v34_v6  ;;  %v1537_v12 = vsub.f32 %v19_v2, %v43_v9  ;;  %v475_v51 = vld [vmem:[%s1806_s2 + $0x10] sm:$0xff] }
  0x13   :  { %1163 = vmatprep.subr.mxu1 %v1313_v0  ;;  %v87_v3 = vunpack.c.h.bf16 %v1500_v61  ;;  %v86_v7 = vunpack.c.l.bf16 %v1500_v61  ;;  %v85_v11 = vunpack.c.h.bf16 %v1528_v8  ;;  %v473_v61 = vld [vmem:[%s1806_s2] sm:$0xff] }
  0x14   :  { %1125 = vmatpush3.xpose.msk.msra.mxu0 %vm114_vm1, %v95_v26  ;;  %v1539_v18 = vsub.f32 %v18_v1, %v42_v10  ;;  %v105_v54 = vsub.f32 %v1459_v47, %v89_v56  ;;  %v493_v47 = vcvt.s32.f32 %v477_v41  ;;  %v489_v1 = vcvt.s32.f32 %v473_v61 }
  0x15   :  { %1126 = vmatprep.subr.mxu0 %v1313_v0  ;;  %v102_v59 = vsub.f32 %v1489_v58, %v86_v7 }
  0x16   :  { %1164 = vmatpush3.xpose.msk.msra.mxu1 %vm114_vm1, %v53_v22  ;;  %v84_v22 = vunpack.c.l.bf16 %v1528_v8 }
  0x17   :  { %1165 = vmatprep.subr.mxu1 %v1313_v0 }
  0x18   :  { %1127 = vmatpush3.xpose.msk.msra.mxu0 %vm114_vm1, %v94_v30  ;;  %v108_v30 = vsub.f32 %v1405_v28, %v92_v40 }
  0x19   :  { %1128 = vmatprep.subr.mxu0 %v1313_v0 }
  0x1a   :  { %1166 = vmatpush3.xpose.msk.msra.mxu1 %vm114_vm1, %v52_v23  ;;  %v1550_v23 = vpack.c.bf16 %v1537_v12, %v1539_v18 }
  0x1b   :  { %1167 = vmatprep.subr.mxu1 %v1313_v0 }
  0x1c   :  { %1129 = vmatpush3.xpose.msk.msra.mxu0 %vm114_vm1, %v93_v36  ;;  %v83_v25 = vunpack.c.h.bf16 %v1550_v23  ;;  %v82_v34 = vunpack.c.l.bf16 %v1550_v23 }
  0x1d   :  { %1130 = vmatprep.subr.mxu0 %v1313_v0 }
  0x1e   :  { %1168 = vmatpush3.xpose.msk.msra.mxu1 %vm114_vm1, %v51_v32  ;;  %v504_v32 = vcvt.s32.f32 %v488_v24  ;;  %v99_v2 = vsub.f32 %v1537_v12, %v83_v25 }
  0x1f   :  { %1169 = vmatprep.subr.mxu1 %v1313_v0 }
  0x20   :  { %1131 = vmatpush3.xpose.msk.msra.mxu0 %vm114_vm1, %v92_v40  ;;  %v106_v40 = vsub.f32 %v1433_v38, %v90_v50 }
  0x21   :  { %1132 = vmatprep.subr.mxu0 %v1313_v0 }
  0x22   :  { %1170 = vmatpush3.xpose.msk.msra.mxu1 %vm114_vm1, %v50_v33  ;;  %v487_v33 = vld [vmem:[%s1806_s2 + $0x70] sm:$0xff] }
  0x23   :  { %1171 = vmatprep.subr.mxu1 %v1313_v0  ;;  %v503_v35 = vcvt.s32.f32 %v487_v33 }
  0x24   :  { %1133 = vmatpush3.xpose.msk.msra.mxu0 %vm114_vm1, %v91_v46 }
  0x25   :  { %1134 = vmatprep.subr.mxu0 %v1313_v0 }
  0x26   :  { %1172 = vmatpush3.xpose.msk.msra.mxu1 %vm114_vm1, %v49_v42  ;;  %v113_v42 = vsub.f32 %v1365_v13, %v97_v19  ;;  %v112_v13 = vsub.f32 %v1368_v14, %v96_v20  ;;  %v501_v19 = vcvt.s32.f32 %v485_v44  ;;  %v111_v14 = vsub.f32 %v1375_v16, %v95_v26  ;;  %v483_v20 = vld [vmem:[%s1806_s2 + $0x50] sm:$0xff]  ;;  %v482_v26 = vld [vmem:[%s1806_s2 + $0x48] sm:$0xff] }
  0x27   :  { %1173 = vmatprep.subr.mxu1 %v1313_v0  ;;  %v499_v16 = vcvt.s32.f32 %v483_v20  ;;  %v498_v17 = vcvt.s32.f32 %v482_v26 }
  0x28   :  { %1135 = vmatpush3.xpose.msk.msra.mxu0 %vm114_vm1, %v90_v50  ;;  %v104_v50 = vsub.f32 %v1461_v48, %v88_v60  ;;  %v492_v48 = vcvt.s32.f32 %v476_v55 }
  0x29   :  { %1136 = vmatprep.subr.mxu0 %v1313_v0 }
  0x2a   :  { %1174 = vmatpush3.xpose.msk.msra.mxu1 %vm114_vm1, %v48_v43  ;;  %v502_v43 = vcvt.s32.f32 %v486_v39 }
  0x2b   :  { %1175 = vmatprep.subr.mxu1 %v1313_v0 }
  0x2c   :  { %1137 = vmatpush3.xpose.msk.msra.mxu0 %vm114_vm1, %v89_v56  ;;  %v103_v56 = vsub.f32 %v1487_v57, %v87_v3  ;;  %v491_v57 = vcvt.s32.f32 %v475_v51 }
  0x2d   :  { %1138 = vmatprep.subr.mxu0 %v1313_v0 }
  0x2e   :  { %1176 = vmatpush3.xpose.msk.msra.mxu1 %vm114_vm1, %v47_v52  ;;  %v109_v52 = vsub.f32 %v1403_v27, %v93_v36  ;;  %v497_v27 = vcvt.s32.f32 %v481_v21  ;;  %v480_v36 = vld [vmem:[%s1806_s2 + $0x38] sm:$0xff] }
  0x2f   :  { %1177 = vmatprep.subr.mxu1 %v1313_v0  ;;  %v496_v28 = vcvt.s32.f32 %v480_v36 }
  0x30   :  { %1139 = vmatpush3.xpose.msk.msra.mxu0 %vm114_vm1, %v88_v60  ;;  %v474_v60 = vld [vmem:[%s1806_s2 + $0x8] sm:$0xff] }
  0x31   :  { %1140 = vmatprep.subr.mxu0 %v1313_v0  ;;  %v490_v58 = vcvt.s32.f32 %v474_v60 }
  0x32   :  { %1178 = vmatpush3.xpose.msk.msra.mxu1 %vm114_vm1, %v46_v53  ;;  %v107_v53 = vsub.f32 %v1431_v37, %v91_v46  ;;  %v495_v37 = vcvt.s32.f32 %v479_v31  ;;  %v478_v46 = vld [vmem:[%s1806_s2 + $0x28] sm:$0xff] }
  0x33   :  { %1179 = vmatprep.subr.mxu1 %v1313_v0  ;;  %v494_v38 = vcvt.s32.f32 %v478_v46 }
  0x34   :  { %1141 = vmatpush3.xpose.msk.msra.mxu0 %vm114_vm1, %v87_v3  ;;  %v98_v3 = vsub.f32 %v1539_v18, %v82_v34 }
  0x35   :  { %1142 = vmatprep.subr.mxu0 %v1313_v0 }
  0x36   :  { %1180 = vmatpush3.xpose.msk.msra.mxu1 %vm114_vm1, %v45_v62  ;;  %v101_v62 = vsub.f32 %v1515_v4, %v85_v11 }
  0x37   :  { %1181 = vmatprep.subr.mxu1 %v1313_v0 }
  0x38   :  { %1143 = vmatpush3.xpose.msk.msra.mxu0 %vm114_vm1, %v86_v7 }
  0x39   :  { %1144 = vmatprep.subr.mxu0 %v1313_v0 }
  0x3a   :  { %1182 = vmatpush3.xpose.msk.msra.mxu1 %vm114_vm1, %v44_v63  ;;  %v100_v63 = vsub.f32 %v1517_v5, %v84_v22 }
  0x3b   :  { %1183 = vmatprep.subr.mxu1 %v1313_v0 }
  0x3c   :  { %1145 = vmatpush3.xpose.msk.msra.mxu0 %vm114_vm1, %v85_v11 }
  0x3d   :  { %1146 = vmatprep.subr.mxu0 %v1313_v0 }
  0x3e   :  { %1184 = vmatpush3.xpose.msk.msra.mxu1 %vm114_vm1, %v43_v9  ;;  %v625_v9 = vlaneseq }
  0x3f   :  { %1185 = vmatprep.subr.mxu1 %v1313_v0 }
  0x40   :  { %1147 = vmatpush3.xpose.msk.msra.mxu0 %vm114_vm1, %v84_v22  ;;  %v1746_v22 = vshrl.u32 %v625_v9, 7 }
  0x41   :  { %1148 = vmatprep.subr.mxu0 %v1313_v0 }
  0x42   :  { %1186 = vmatpush3.xpose.msk.msra.mxu1 %vm114_vm1, %v42_v10  ;;  %v662_v45 = vsub.s32 5, %v1746_v22 }
  0x43   :  { %1225 = vmatprep.subr.mxu1 %v1313_v0 }
  0x44   :  { %1149 = vmatpush3.xpose.msk.msra.mxu0 %vm114_vm1, %v83_v25  ;;  %v634_v25 = vsub.s32 1, %v1746_v22 }
  0x45   :  { %1150 = vmatprep.subr.mxu0 %v1313_v0  ;;  %1188 = vmatmul.mubr.msk.f32.vlgmr.msra.gmra.mxu1 %vm114_vm1, %v1567_v29 }
  0x46   :  { %1226 = vmatpush3.xpose.msk.msra.mxu1 %vm114_vm1, %v504_v32  ;;  %1257 = vmatprep.mubr.msk.f32.mxu1 %vm1314_vm0, %v1313_v0 }
  0x47   :  { %1227 = vmatprep.subr.mxu1 %v1313_v0 }
  0x48   :  { %1151 = vmatpush3.xpose.msk.msra.mxu0 %vm114_vm1, %v82_v34  ;;  %v648_v34 = vsub.s32 3, %v1746_v22 }
  0x49   :  { %1190 = vmatprep.subr.mxu0 %v1313_v0 }
  0x4a   :  { %1228 = vmatpush3.xpose.msk.msra.mxu1 %vm114_vm1, %v503_v35 }
  0x4b   :  { %1153 = vmatmul.mubr.msk.f32.vlgmr.msra.gmra.mxu0 %vm114_vm1, %v1567_v29  ;;  %1229 = vmatprep.subr.mxu1 %v1313_v0 }
  0x4c   :  { %1191 = vmatpush3.xpose.msk.msra.mxu0 %vm114_vm1, %v113_v42  ;;  %1222 = vmatprep.mubr.msk.f32.mxu0 %vm1314_vm0, %v1313_v0 }
  0x4d   :  { %1192 = vmatprep.subr.mxu0 %v1313_v0 }
  0x4e   :  { %1230 = vmatpush3.xpose.msk.msra.mxu1 %vm114_vm1, %v502_v43  ;;  %v655_v43 = vsub.s32 4, %v1746_v22 }
  0x4f   :  { %1231 = vmatprep.subr.mxu1 %v1313_v0 }
  0x50   :  { %1193 = vmatpush3.xpose.msk.msra.mxu0 %vm114_vm1, %v112_v13 }
  0x51   :  { %1194 = vmatprep.subr.mxu0 %v1313_v0 }
  0x52   :  { %1232 = vmatpush3.xpose.msk.msra.mxu1 %vm114_vm1, %v501_v19 }
  0x53   :  { %1233 = vmatprep.subr.mxu1 %v1313_v0 }
  0x54   :  { %1195 = vmatpush3.xpose.msk.msra.mxu0 %vm114_vm1, %v111_v14 }
  0x55   :  { %1196 = vmatprep.subr.mxu0 %v1313_v0 }
  0x56   :  { %1234 = vmatpush3.xpose.msk.msra.mxu1 %vm114_vm1, %v500_v15 }
  0x57   :  { %1235 = vmatprep.subr.mxu1 %v1313_v0 }
  0x58   :  { %1197 = vmatpush3.xpose.msk.msra.mxu0 %vm114_vm1, %v110_v49  ;;  %v669_v49 = vsub.s32 6, %v1746_v22 }
  0x59   :  { %1198 = vmatprep.subr.mxu0 %v1313_v0 }
  0x5a   :  { %1236 = vmatpush3.xpose.msk.msra.mxu1 %vm114_vm1, %v499_v16 }
  0x5b   :  { %1237 = vmatprep.subr.mxu1 %v1313_v0 }
  0x5c   :  { %1199 = vmatpush3.xpose.msk.msra.mxu0 %vm114_vm1, %v109_v52 }
  0x5d   :  { %1200 = vmatprep.subr.mxu0 %v1313_v0 }
  0x5e   :  { %1238 = vmatpush3.xpose.msk.msra.mxu1 %vm114_vm1, %v498_v17  ;;  %v676_v17 = vsub.s32 7, %v1746_v22 }
  0x5f   :  { %1239 = vmatprep.subr.mxu1 %v1313_v0 }
  0x60   :  { %1201 = vmatpush3.xpose.msk.msra.mxu0 %vm114_vm1, %v108_v30 }
  0x61   :  { %1202 = vmatprep.subr.mxu0 %v1313_v0 }
  0x62   :  { %1240 = vmatpush3.xpose.msk.msra.mxu1 %vm114_vm1, %v497_v27 }
  0x63   :  { %1241 = vmatprep.subr.mxu1 %v1313_v0 }
  0x64   :  { %1203 = vmatpush3.xpose.msk.msra.mxu0 %vm114_vm1, %v107_v53 }
  0x65   :  { %1204 = vmatprep.subr.mxu0 %v1313_v0 }
  0x66   :  { %1242 = vmatpush3.xpose.msk.msra.mxu1 %vm114_vm1, %v496_v28 }
  0x67   :  { %1243 = vmatprep.subr.mxu1 %v1313_v0 }
  0x68   :  { %1205 = vmatpush3.xpose.msk.msra.mxu0 %vm114_vm1, %v106_v40 }
  0x69   :  { %1206 = vmatprep.subr.mxu0 %v1313_v0 }
  0x6a   :  { %1244 = vmatpush3.xpose.msk.msra.mxu1 %vm114_vm1, %v495_v37 }
  0x6b   :  { %1245 = vmatprep.subr.mxu1 %v1313_v0 }
  0x6c   :  { %1207 = vmatpush3.xpose.msk.msra.mxu0 %vm114_vm1, %v105_v54 }
  0x6d   :  { %1208 = vmatprep.subr.mxu0 %v1313_v0 }
  0x6e   :  { %1246 = vmatpush3.xpose.msk.msra.mxu1 %vm114_vm1, %v494_v38 }
  0x6f   :  { %1247 = vmatprep.subr.mxu1 %v1313_v0 }
  0x70   :  { %1209 = vmatpush3.xpose.msk.msra.mxu0 %vm114_vm1, %v104_v50 }
  0x71   :  { %1210 = vmatprep.subr.mxu0 %v1313_v0 }
  0x72   :  { %1248 = vmatpush3.xpose.msk.msra.mxu1 %vm114_vm1, %v493_v47 }
  0x73   :  { %1249 = vmatprep.subr.mxu1 %v1313_v0 }
  0x74   :  { %1211 = vmatpush3.xpose.msk.msra.mxu0 %vm114_vm1, %v103_v56 }
  0x75   :  { %1212 = vmatprep.subr.mxu0 %v1313_v0 }
  0x76   :  { %1250 = vmatpush3.xpose.msk.msra.mxu1 %vm114_vm1, %v492_v48 }
  0x77   :  { %1251 = vmatprep.subr.mxu1 %v1313_v0 }
  0x78   :  { %1213 = vmatpush3.xpose.msk.msra.mxu0 %vm114_vm1, %v102_v59 }
  0x79   :  { %1214 = vmatprep.subr.mxu0 %v1313_v0 }
  0x7a   :  { %1252 = vmatpush3.xpose.msk.msra.mxu1 %vm114_vm1, %v491_v57 }
  0x7b   :  { %1253 = vmatprep.subr.mxu1 %v1313_v0 }
  0x7c   :  { %1215 = vmatpush3.xpose.msk.msra.mxu0 %vm114_vm1, %v101_v62 }
  0x7d   :  { %1216 = vmatprep.subr.mxu0 %v1313_v0 }
  0x7e   :  { %1254 = vmatpush3.xpose.msk.msra.mxu1 %vm114_vm1, %v490_v58 }
  0x7f   :  { %1255 = vmatprep.subr.mxu1 %v1313_v0 }
  0x80   :  { %1217 = vmatpush3.xpose.msk.msra.mxu0 %vm114_vm1, %v100_v63 }
  0x81   :  { %1218 = vmatprep.subr.mxu0 %v1313_v0 }
  0x82   :  { %1256 = vmatpush3.xpose.msk.msra.mxu1 %vm114_vm1, %v489_v1 }
  0x84   :  { %1219 = vmatpush3.xpose.msk.msra.mxu0 %vm114_vm1, %v99_v2 }
  0x85   :  { %1258 = vmatmul.mubr.msk.f32.vlgmr.msra.gmra.mxu1 %vm114_vm1, %v1567_v29  ;;  %1220 = vmatprep.subr.mxu0 %v1313_v0  ;;  %v627_v0 = vsub.s32 0, %v1746_v22 }
  0x88   :  { %1221 = vmatpush3.xpose.msk.msra.mxu0 %vm114_vm1, %v98_v3 }
  0x8b   :  { %1223 = vmatmul.mubr.msk.f32.vlgmr.msra.gmra.mxu0 %vm114_vm1, %v1567_v29  ;;  %v641_v29 = vsub.s32 2, %v1746_v22 }
 0x105   :  { %v350_v4 = vpop.f32.mrf.mxu1 }
 0x107   :  { %v1189_v5 = vpop.f32.mrf.mxu1 }
 0x10b   :  { %v232_v6 = vpop.f32.mrf.mxu0 }
 0x10c   :  { %v351_v7 = vadd.f32 %v350_v4, %v232_v6 }
 0x10d   :  { %v1154_v8 = vpop.f32.mrf.mxu0 }
 0x145   :  { %v619_v10 = vpop.f32.mrf.mxu1 }
 0x146   :  { %v620_v11 = vadd.f32 0.5, %v619_v10 }
 0x147   :  { %v1259_v12 = vpop.f32.mrf.mxu1 }
 0x148   :  { %v1260_v18 = vtrunc.f32 %v620_v11 }
 0x14a   :  { %v1261_v23 = vcvt.f32.s32 %v1260_v18 }
 0x14b   :  { %v468_v24 = vpop.f32.mrf.mxu0 }
 0x14c   :  { %v472_v33 = vadd.f32 %v468_v24, %v351_v7  ;;  %vm624_vm2 = vcmp.eq.s32.totalorder %v1261_v23, 0  ;;  %vm631_vm3 = vcmp.eq.s32.totalorder %v1261_v23, 1  ;;  %vm638_vm4 = vcmp.eq.s32.totalorder %v1261_v23, 2 }
 0x14d   :  { %v1224_v32 = vpop.f32.mrf.mxu0  ;;  %vm645_vm5 = vcmp.eq.s32.totalorder %v1261_v23, 3  ;;  %vm652_vm6 = vcmp.eq.s32.totalorder %v1261_v23, 4  ;;  %vm659_vm7 = vcmp.eq.s32.totalorder %v1261_v23, 5  ;;  %vm666_vm8 = vcmp.eq.s32.totalorder %v1261_v23, 6 }
 0x14e   :  { %v628_v35 = vrot.slane %v472_v33, %v627_v0  ;;  %v635_v39 = vrot.slane %v472_v33, %v634_v25  ;;  %v642_v42 = vrot.slane %v472_v33, %v641_v29  ;;  %v649_v19 = vrot.slane %v472_v33, %v648_v34 }
 0x14f   :  { %v656_v20 = vrot.slane %v472_v33, %v655_v43  ;;  %v663_v52 = vrot.slane %v472_v33, %v662_v45  ;;  %v670_v27 = vrot.slane %v472_v33, %v669_v49  ;;  %v677_v28 = vrot.slane %v472_v33, %v676_v17 }
 0x150   :  { %v629_v44 = vsel %vm624_vm2, %v628_v35, 0.0  ;;  %v636_v13 = vsel %vm631_vm3, %v635_v39, 0.0  ;;  %v643_v15 = vsel %vm638_vm4, %v642_v42, 0.0  ;;  %v650_v26 = vsel %vm645_vm5, %v649_v19, 0.0 }
 0x151   :  { %v637_v14 = vadd.f32 %v636_v13, %v629_v44  ;;  %v657_v30 = vsel %vm652_vm6, %v656_v20, 0.0  ;;  %v664_v53 = vsel %vm659_vm7, %v663_v52, 0.0  ;;  %vm673_vm9 = vcmp.eq.s32.totalorder %v1261_v23, 7 }
 0x152   :  { %v671_v40 = vsel %vm666_vm8, %v670_v27, 0.0  ;;  %v678_v46 = vsel %vm673_vm9, %v677_v28, 0.0 }
 0x153   :  { %v644_v16 = vadd.f32 %v643_v15, %v637_v14 }
 0x155   :  { %v651_v21 = vadd.f32 %v650_v26, %v644_v16 }
 0x157   :  { %v658_v36 = vadd.f32 %v657_v30, %v651_v21 }
 0x159   :  { %v665_v31 = vadd.f32 %v664_v53, %v658_v36 }
 0x15b   :  { %v672_v37 = vadd.f32 %v671_v40, %v665_v31 }
 0x15d   :  { %v679_v54 = vadd.f32 %v678_v46, %v672_v37 }
 0x15f   :  { %v682_v38 = vrot.slane %v679_v54, 7  ;;  %v725_v50 = vrot.slane %v679_v54, 6  ;;  %v769_v48 = vrot.slane %v679_v54, 5  ;;  %v812_v58 = vrot.slane %v679_v54, 4 }
 0x160   :  { %v856_v6 = vrot.slane %v679_v54, 3  ;;  %v899_v10 = vrot.slane %v679_v54, 2  ;;  %v942_v25 = vrot.slane %v679_v54, 1 }
 0x161   :  { %v684_v41 = vmax.f32 %v679_v54, %v682_v38 }
 0x163   :  { %v685_v47 = vsub.f32 %v679_v54, %v684_v41  ;;  %v689_v55 = vrot.slane %v684_v41, 1  ;;  %v727_v56 = vmax.f32 %v684_v41, %v725_v50 }
 0x165   :  { %v1756_v51 = vsub.f32 %v679_v54, %v689_v55  ;;  %v728_v59 = vsub.f32 %v684_v41, %v727_v56  ;;  %v733_v57 = vrot.slane %v727_v56, 2  ;;  %v686_v60 = vmul.f32 1.442695, %v685_v47 }
 0x166   :  { %v771_v62 = vmax.f32 %v727_v56, %v769_v48 }
 0x167   :  { %v692_v61 = vmul.f32 1.442695, %v1756_v51  ;;  %v1759_v63 = vsub.f32 %v679_v54, %v733_v57  ;;  %v729_v1 = vmul.f32 1.442695, %v728_v59 }
 0x168   :  { %v772_v2 = vsub.f32 %v727_v56, %v771_v62  ;;  %v777_v3 = vrot.slane %v771_v62, 3  ;;  %v814_v4 = vmax.f32 %v771_v62, %v812_v58  ;;  %v1315_v56 = vmov 1966171168  }
 0x169   :  { %1265 = vpow2.f32 %v692_v61  ;;  %v736_v5 = vmul.f32 1.442695, %v1759_v63  ;;  %v708_v48 = vunpack.c.l.s4 %v1315_v56 }
 0x16a   :  { %1267 = vpow2.f32 %v686_v60  ;;  %v1762_v7 = vsub.f32 %v679_v54, %v777_v3  ;;  %v820_v8 = vrot.slane %v814_v4, 4  ;;  %v858_v9 = vmax.f32 %v814_v4, %v856_v6 }
 0x16b   :  { %1269 = vpow2.f32 %v736_v5  ;;  %v773_v11 = vmul.f32 1.442695, %v772_v2  ;;  %v815_v18 = vsub.f32 %v771_v62, %v814_v4  ;;  %v709_v2 = vunpack.c.0.s8 %v708_v48 }
 0x16c   :  { %1271 = vpow2.f32 %v729_v1  ;;  %v780_v12 = vmul.f32 1.442695, %v1762_v7  ;;  %v1765_v23 = vsub.f32 %v679_v54, %v820_v8  ;;  %v864_v24 = vrot.slane %v858_v9, 5 }
 0x16d   :  { %v901_v0 = vmax.f32 %v858_v9, %v899_v10  ;;  %v816_v35 = vmul.f32 1.442695, %v815_v18  ;;  %v859_v39 = vsub.f32 %v814_v4, %v858_v9 }
 0x16e   :  { %1273 = vpow2.f32 %v780_v12  ;;  %v823_v29 = vmul.f32 1.442695, %v1765_v23  ;;  %v1768_v32 = vsub.f32 %v679_v54, %v864_v24  ;;  %v1779_v12 = vsub.s32 %v709_v2, %v1746_v22 }
 0x16f   :  { %v907_v33 = vrot.slane %v901_v0, 6  ;;  %v944_v34 = vmax.f32 %v901_v0, %v942_v25  ;;  %1275 = vpow2.f32 %v773_v11  ;;  %v860_v13 = vmul.f32 1.442695, %v859_v39 }
 0x170   :  { %1277 = vpow2.f32 %v823_v29  ;;  %v867_v43 = vmul.f32 1.442695, %v1768_v32  ;;  %v902_v19 = vsub.f32 %v858_v9, %v901_v0 }
 0x171   :  { %v1770_v42 = vsub.f32 %v679_v54, %v907_v33  ;;  %v950_v44 = vrot.slane %v944_v34, 7  ;;  %1279 = vpow2.f32 %v816_v35  ;;  %v945_v21 = vsub.f32 %v901_v0, %v944_v34 }
 0x172   :  { %1281 = vpow2.f32 %v867_v43  ;;  %v903_v17 = vmul.f32 1.442695, %v902_v19 }
 0x173   :  { %v910_v14 = vmul.f32 1.442695, %v1770_v42  ;;  %v1774_v15 = vsub.f32 %v679_v54, %v950_v44  ;;  %1283 = vpow2.f32 %v860_v13  ;;  %v946_v31 = vmul.f32 1.442695, %v945_v21 }
 0x175   :  { %1285 = vpow2.f32 %v910_v14  ;;  %v953_v30 = vmul.f32 1.442695, %v1774_v15 }
 0x176   :  { %v1266_v45 = vpop.eup %1265 }
 0x177   :  { %v1268_v20 = vpop.eup %1267  ;;  %v695_v49 = vrot.slane %v1266_v45, 7 }
 0x178   :  { %v1270_v16 = vpop.eup %1269 }
 0x179   :  { %v1272_v26 = vpop.eup %1271  ;;  %v697_v52 = vadd.f32 %v1268_v20, %v695_v49  ;;  %v739_v36 = vrot.slane %v1270_v16, 6  ;;  %v680_v16 = vld [vmem:[%s1808_s3] sm:$0x1] }
 0x17a   :  { %vm748_vm10 = vcmp.gt.s32.totalorder %v680_v16, 5  ;;  %vm704_vm11 = vcmp.gt.s32.totalorder %v680_v16, 6  ;;  %vm792_vm12 = vcmp.gt.s32.totalorder %v680_v16, 4  ;;  %vm835_vm13 = vcmp.gt.s32.totalorder %v680_v16, 3 }
 0x17b   :  { %1287 = vlog2.f32 %v697_v52  ;;  %v731_v27 = vmul.f32 %v1272_v26, %v697_v52  ;;  %v1274_v53 = vpop.eup %1273  ;;  %vm879_vm14 = vcmp.gt.s32.totalorder %v680_v16, 2  ;;  %vm922_vm15 = vcmp.gt.s32.totalorder %v680_v16, 1 }
 0x17c   :  { %1289 = vpow2.f32 %v903_v17  ;;  %v1276_v40 = vpop.eup %1275  ;;  %v783_v46 = vrot.slane %v1274_v53, 5  ;;  %vm965_vm0 = vcmp.gt.s32.totalorder %v680_v16, 0 }
 0x17d   :  { %v741_v28 = vadd.f32 %v739_v36, %v731_v27  ;;  %1291 = vpow2.f32 %v953_v30  ;;  %v1278_v54 = vpop.eup %1277 }
 0x17e   :  { %v1280_v41 = vpop.eup %1279  ;;  %v826_v47 = vrot.slane %v1278_v54, 4 }
 0x17f   :  { %1293 = vlog2.f32 %v741_v28  ;;  %v775_v37 = vmul.f32 %v1276_v40, %v741_v28  ;;  %v1282_v55 = vpop.eup %1281 }
 0x180   :  { %1295 = vpow2.f32 %v946_v31  ;;  %v1284_v57 = vpop.eup %1283  ;;  %v870_v58 = vrot.slane %v1282_v55, 3 }
 0x181   :  { %v785_v38 = vadd.f32 %v783_v46, %v775_v37 }
 0x182   :  { %v1286_v60 = vpop.eup %1285 }
 0x183   :  { %1297 = vlog2.f32 %v785_v38  ;;  %v818_v50 = vmul.f32 %v1280_v41, %v785_v38  ;;  %v913_v9 = vrot.slane %v1286_v60, 2 }
 0x185   :  { %v828_v59 = vadd.f32 %v826_v47, %v818_v50 }
 0x187   :  { %1299 = vlog2.f32 %v828_v59  ;;  %v862_v62 = vmul.f32 %v1284_v57, %v828_v59 }
 0x188   :  { %v1288_v61 = vpop.eup %1287 }
 0x189   :  { %v699_v1 = vmul.f32 0.6931472, %v1288_v61  ;;  %v872_v3 = vadd.f32 %v870_v58, %v862_v62  ;;  %v1290_v4 = vpop.eup %1289 }
 0x18a   :  { %v1292_v5 = vpop.eup %1291 }
 0x18b   :  { %v701_v6 = vrot.slane %v699_v1, 1  ;;  %1301 = vlog2.f32 %v872_v3  ;;  %v905_v8 = vmul.f32 %v1290_v4, %v872_v3  ;;  %v956_v25 = vrot.slane %v1292_v5, 1 }
 0x18c   :  { %v1294_v10 = vpop.eup %1293 }
 0x18d   :  { %v703_v11 = vsub.f32 %v1756_v51, %v701_v6  ;;  %v743_v18 = vmul.f32 0.6931472, %v1294_v10  ;;  %v915_v24 = vadd.f32 %v913_v9, %v905_v8  ;;  %v1296_v0 = vpop.eup %1295 }
 0x18f   :  { %v706_v29 = vcombine.high %v703_v11, %v703_v11  ;;  %v745_v33 = vrot.slane %v743_v18, 2  ;;  %1303 = vlog2.f32 %v915_v24  ;;  %v948_v34 = vmul.f32 %v1296_v0, %v915_v24 }
 0x190   :  { %v1298_v35 = vpop.eup %1297 }
 0x191   :  { %v713_v39 = vrot.slane %v706_v29, %v1779_v12  ;;  %v747_v43 = vsub.f32 %v1759_v63, %v745_v33  ;;  %v787_v44 = vmul.f32 0.6931472, %v1298_v35  ;;  %v958_v13 = vadd.f32 %v956_v25, %v948_v34 }
 0x193   :  { %v750_v19 = vcombine.high %v747_v43, %v747_v43  ;;  %v789_v51 = vrot.slane %v787_v44, 3  ;;  %1305 = vlog2.f32 %v958_v13  ;;  %v720_v45 = vrot.slane %v713_v39, %v1779_v12 }
 0x194   :  { %v1300_v22 = vpop.eup %1299 }
 0x195   :  { %v757_v14 = vrot.slane %v750_v19, %v1779_v12  ;;  %v791_v20 = vsub.f32 %v1762_v7, %v789_v51  ;;  %v830_v49 = vmul.f32 0.6931472, %v1300_v22  ;;  %v721_v21 = vcombine.high %v720_v45, %v720_v45 }
 0x197   :  { %v758_v26 = vcombine.high %v757_v14, %v757_v14  ;;  %v794_v52 = vcombine.high %v791_v20, %v791_v20  ;;  %v832_v63 = vrot.slane %v830_v49, 4  ;;  %v723_v46 = vsel %vm704_vm11, %v721_v21, 0.0 }
 0x198   :  { %v1302_v17 = vpop.eup %1301 }
 0x199   :  { %v765_v30 = vrot.slane %v758_v26, %v1779_v12  ;;  %v801_v27 = vrot.slane %v794_v52, %v1779_v12  ;;  %v834_v36 = vsub.f32 %v1765_v23, %v832_v63  ;;  %v874_v53 = vmul.f32 0.6931472, %v1302_v17 }
 0x19b   :  { %v767_v7 = vsel %vm748_vm10, %v765_v30, 0.0  ;;  %v808_v28 = vrot.slane %v801_v27, %v1779_v12  ;;  %v843_v31 = vrot.slane %v834_v36, %v1779_v12  ;;  %v876_v40 = vrot.slane %v874_v53, 5 }
 0x19c   :  { %v1304_v37 = vpop.eup %1303  ;;  %v768_v50 = vadd.f32 %v767_v7, %v723_v46 }
 0x19d   :  { %v844_v54 = vcombine.high %v843_v31, %v843_v31  ;;  %v878_v38 = vsub.f32 %v1768_v32, %v876_v40  ;;  %v917_v41 = vmul.f32 0.6931472, %v1304_v37  ;;  %v810_v47 = vsel %vm792_vm12, %v808_v28, 0.0 }
 0x19e   :  { %v811_v58 = vadd.f32 %v810_v47, %v768_v50 }
 0x19f   :  { %v851_v55 = vrot.slane %v844_v54, %v1779_v12  ;;  %v887_v23 = vrot.slane %v878_v38, %v1779_v12  ;;  %v919_v56 = vrot.slane %v917_v41, 6 }
 0x1a0   :  { %v1306_v48 = vpop.eup %1305 }
 0x1a1   :  { %v852_v59 = vcombine.high %v851_v55, %v851_v55  ;;  %v894_v57 = vrot.slane %v887_v23, %v1779_v12  ;;  %v921_v60 = vsub.f32 %v1770_v42, %v919_v56  ;;  %v960_v62 = vmul.f32 0.6931472, %v1306_v48 }
 0x1a3   :  { %v854_v61 = vsel %vm835_vm13, %v852_v59, 0.0  ;;  %v895_v32 = vcombine.high %v894_v57, %v894_v57  ;;  %v930_v1 = vrot.slane %v921_v60, %v1779_v12  ;;  %v962_v2 = vrot.slane %v960_v62, 7 }
 0x1a4   :  { %v855_v3 = vadd.f32 %v854_v61, %v811_v58 }
 0x1a5   :  { %v897_v4 = vsel %vm879_vm14, %v895_v32, 0.0  ;;  %v931_v5 = vcombine.high %v930_v1, %v930_v1  ;;  %v964_v8 = vsub.f32 %v1774_v15, %v962_v2 }
 0x1a6   :  { %v898_v9 = vadd.f32 %v897_v4, %v855_v3 }
 0x1a7   :  { %v938_v6 = vrot.slane %v931_v5, %v1779_v12  ;;  %v966_v11 = vsel %vm965_vm0, %v964_v8, 0.0 }
 0x1a9   :  { %v940_v10 = vsel %vm922_vm15, %v938_v6, 0.0 }
 0x1aa   :  { %v941_v42 = vadd.f32 %v940_v10, %v898_v9 }
 0x1ac   :  { %v967_v18 = vadd.f32 %v966_v11, %v941_v42 }
 0x1ae   :  { %v968_v24 = vmax.f32 %v967_v18, -18.420681 }
 0x1b0   :  { %v969_v0 = vsub.f32 %v967_v18, %v968_v24  ;;  %v972_v25 = vsub.f32 -18.420681, %v968_v24 }
 0x1b2   :  { %v970_v29 = vmul.f32 1.442695, %v969_v0  ;;  %v973_v33 = vmul.f32 1.442695, %v972_v25 }
 0x1b4   :  { %1307 = vpow2.f32 %v970_v29 }
 0x1b5   :  { %1309 = vpow2.f32 %v973_v33 }
 0x1c1   :  { %v1308_v34 = vpop.eup %1307 }
 0x1c2   :  { %v1310_v35 = vpop.eup %1309 }
 0x1c3   :  { %v975_v39 = vadd.f32 %v1310_v35, %v1308_v34 }
 0x1c5   :  { %1311 = vlog2.f32 %v975_v39 }
 0x1d2   :  { %v1312_v12 = vpop.eup %1311 }
 0x1d3   :  { %v977_v43 = vmul.f32 0.6931472, %v1312_v12 }
 0x1d5   :  { %v978_v15 = vadd.f32 %v977_v43, %v968_v24 }
 0x1d7   :  { %979 = vst [vmem:[%s1809_s4] sm:$0x1] %v978_v15 }

</bundles_post_ra>
